<compile_context>
chip_gen: v7x
topology: tpu7x:2x2x1
jax: 0.10.0
libtpu: 0.0.40
codegen_flags: <defaults>
</compile_context>

<pallas_src>
import jax
import jax.numpy as jnp
from jax.experimental import pallas as pl
from jax.experimental.pallas import tpu as pltpu


def linear_kernel(x_ref, w_ref, b_ref, o_ref):
    """x_ref: [IN, tn] VMEM, w_ref: [IN, OUT] SMEM, b_ref: [OUT] SMEM,
    o_ref: [OUT, tn] VMEM.  Pure VPU broadcast-FMA, fully unrolled."""
    in_f = x_ref.shape[0]
    out_f = o_ref.shape[0]
    # Load each (lane-dense) input row once; reuse across all output features.
    rows = [x_ref[k:k + 1, :] for k in range(in_f)]
    for j in range(out_f):
        acc = rows[0] * w_ref[0, j]
        for k in range(1, in_f):
            acc = acc + rows[k] * w_ref[k, j]
        # Full-lane-width store of one output feature row.
        o_ref[j:j + 1, :] = (acc + b_ref[j]).astype(o_ref.dtype)


def mlp_forward(x, w, b, *, block_n=16384):
    """x: [N, 2] f32, w: [2, 3] f32 (in, out), b: [3] f32 -> [N, 3] f32."""
    n, in_features = x.shape
    assert w.shape[0] == in_features
    out_features = w.shape[1]
    b = b.reshape(out_features)

    # Batch-last (lane-dense) layout for the kernel.
    x_t = x.T  # [in, N]

    if n > block_n:
        tn = block_n                      # multiple of 128 -> lane-dense tiles
        n_pad = pl.cdiv(n, tn) * tn
        if n_pad != n:
            x_t = jnp.pad(x_t, ((0, 0), (0, n_pad - n)))
    else:
        tn = n                            # block == full array dim: no (8,128) constraint
        n_pad = n

    grid = (n_pad // tn,)

    flops = 2 * n * in_features * out_features
    bytes_accessed = 4 * (
        n * in_features + n * out_features
        + in_features * out_features + out_features
    )

    out_t = pl.pallas_call(
        linear_kernel,
        out_shape=jax.ShapeDtypeStruct((out_features, n_pad), x.dtype),
        grid_spec=pl.GridSpec(
            grid=grid,
            in_specs=[
                # x tile: [in, tn], walked along the lane (batch) axis.
                pl.BlockSpec((in_features, tn), lambda i: (0, i)),
                # Tiny weight / bias tables: whole arrays resident in SMEM,
                # read as scalars inside the kernel.
                pl.BlockSpec(memory_space=pltpu.MemorySpace.SMEM),
                pl.BlockSpec(memory_space=pltpu.MemorySpace.SMEM),
            ],
            out_specs=pl.BlockSpec((out_features, tn), lambda i: (0, i)),
        ),
        compiler_params=pltpu.CompilerParams(
            # Batch axis is embarrassingly parallel -> lets v7x use both TCs;
            # harmless on single-TC v5e/v6e.
            dimension_semantics=("parallel",),
        ),
        cost_estimate=pl.CostEstimate(
            flops=flops, transcendentals=0, bytes_accessed=bytes_accessed
        ),
    )(x_t, w, b)

    # Drop lane padding, restore the PyTorch [N, out] layout.
    return out_t[:, :n].T


if __name__ == "__main__":
    key = jax.random.PRNGKey(0)
    k_x, k_w, k_b = jax.random.split(key, 3)

    batch = 8
    in_features, out_features = 2, 3

    x = jax.random.normal(k_x, (batch, in_features), dtype=jnp.float32)
    # Parameters match torch.nn.Linear(2, 3): weight stored as [in, out]
    # (transposed vs torch's [out, in]) and bias as [out].
    w = jax.random.normal(k_w, (in_features, out_features), dtype=jnp.float32) * 0.5
    b = jax.random.normal(k_b, (out_features,), dtype=jnp.float32) * 0.1

    out = mlp_forward(x, w, b)
    jax.block_until_ready(out)

    # Reference check in plain JAX.
    ref = x @ w + b
    assert out.shape == (batch, out_features)
    assert jnp.allclose(out, ref, atol=1e-5, rtol=1e-5)

    print("KERNEL_OK")
</pallas_src>

<mosaic_0001>
module attributes {stable_mosaic.version = 11 : i64} {
  func.func @linear_kernel(%arg0: i32, %arg1: memref<2x8xf32, #tpu.memory_space<vmem>>, %arg2: memref<2x3xf32, #tpu.memory_space<smem>>, %arg3: memref<3xf32, #tpu.memory_space<smem>>, %arg4: memref<3x8xf32, #tpu.memory_space<vmem>>) attributes {dimension_semantics = [#tpu.dimension_semantics<parallel>], iteration_bounds = array<i64: 1>, scalar_prefetch = 0 : i64, scratch_operands = 0 : i64, tpu.core_type = #tpu.core_type<tc>, window_params = [{transform_indices = @transform_0, window_bounds = array<i64: 2, 8>}, {transform_indices = @transform_1, window_bounds = array<i64: 2, 3>}, {transform_indices = @transform_2, window_bounds = array<i64: 3>}, {transform_indices = @transform_3, window_bounds = array<i64: 3, 8>}]} {
    %c0 = arith.constant 0 : index
    %c0_0 = arith.constant 0 : index
    %0 = vector.load %arg1[%c0, %c0_0] : memref<2x8xf32, #tpu.memory_space<vmem>>, vector<1x8xf32>
    %c1 = arith.constant 1 : index
    %c0_1 = arith.constant 0 : index
    %1 = vector.load %arg1[%c1, %c0_1] : memref<2x8xf32, #tpu.memory_space<vmem>>, vector<1x8xf32>
    %c0_2 = arith.constant 0 : index
    %c0_3 = arith.constant 0 : index
    %2 = memref.load %arg2[%c0_2, %c0_3] : memref<2x3xf32, #tpu.memory_space<smem>>
    %3 = vector.broadcast %2 : f32 to vector<1x8xf32>
    %4 = arith.mulf %0, %3 : vector<1x8xf32>
    %c1_4 = arith.constant 1 : index
    %c0_5 = arith.constant 0 : index
    %5 = memref.load %arg2[%c1_4, %c0_5] : memref<2x3xf32, #tpu.memory_space<smem>>
    %6 = vector.broadcast %5 : f32 to vector<1x8xf32>
    %7 = arith.mulf %1, %6 : vector<1x8xf32>
    %8 = arith.addf %4, %7 : vector<1x8xf32>
    %c0_6 = arith.constant 0 : index
    %9 = memref.load %arg3[%c0_6] : memref<3xf32, #tpu.memory_space<smem>>
    %10 = vector.broadcast %9 : f32 to vector<1x8xf32>
    %11 = arith.addf %8, %10 : vector<1x8xf32>
    %c0_7 = arith.constant 0 : index
    %c0_8 = arith.constant 0 : index
    %12 = vector.load %arg4[%c0_7, %c0_8] : memref<3x8xf32, #tpu.memory_space<vmem>>, vector<1x8xf32>
    tpu.vector_store %arg4[%c0_7, %c0_8], %11 {strides = array<i32>} : memref<3x8xf32, #tpu.memory_space<vmem>>, vector<1x8xf32>,
    %c0_9 = arith.constant 0 : index
    %c1_10 = arith.constant 1 : index
    %13 = memref.load %arg2[%c0_9, %c1_10] : memref<2x3xf32, #tpu.memory_space<smem>>
    %14 = vector.broadcast %13 : f32 to vector<1x8xf32>
    %15 = arith.mulf %0, %14 : vector<1x8xf32>
    %c1_11 = arith.constant 1 : index
    %c1_12 = arith.constant 1 : index
    %16 = memref.load %arg2[%c1_11, %c1_12] : memref<2x3xf32, #tpu.memory_space<smem>>
    %17 = vector.broadcast %16 : f32 to vector<1x8xf32>
    %18 = arith.mulf %1, %17 : vector<1x8xf32>
    %19 = arith.addf %15, %18 : vector<1x8xf32>
    %c1_13 = arith.constant 1 : index
    %20 = memref.load %arg3[%c1_13] : memref<3xf32, #tpu.memory_space<smem>>
    %21 = vector.broadcast %20 : f32 to vector<1x8xf32>
    %22 = arith.addf %19, %21 : vector<1x8xf32>
    %c1_14 = arith.constant 1 : index
    %c0_15 = arith.constant 0 : index
    %23 = vector.load %arg4[%c1_14, %c0_15] : memref<3x8xf32, #tpu.memory_space<vmem>>, vector<1x8xf32>
    tpu.vector_store %arg4[%c1_14, %c0_15], %22 {strides = array<i32>} : memref<3x8xf32, #tpu.memory_space<vmem>>, vector<1x8xf32>,
    %c0_16 = arith.constant 0 : index
    %c2 = arith.constant 2 : index
    %24 = memref.load %arg2[%c0_16, %c2] : memref<2x3xf32, #tpu.memory_space<smem>>
    %25 = vector.broadcast %24 : f32 to vector<1x8xf32>
    %26 = arith.mulf %0, %25 : vector<1x8xf32>
    %c1_17 = arith.constant 1 : index
    %c2_18 = arith.constant 2 : index
    %27 = memref.load %arg2[%c1_17, %c2_18] : memref<2x3xf32, #tpu.memory_space<smem>>
    %28 = vector.broadcast %27 : f32 to vector<1x8xf32>
    %29 = arith.mulf %1, %28 : vector<1x8xf32>
    %30 = arith.addf %26, %29 : vector<1x8xf32>
    %c2_19 = arith.constant 2 : index
    %31 = memref.load %arg3[%c2_19] : memref<3xf32, #tpu.memory_space<smem>>
    %32 = vector.broadcast %31 : f32 to vector<1x8xf32>
    %33 = arith.addf %30, %32 : vector<1x8xf32>
    %c2_20 = arith.constant 2 : index
    %c0_21 = arith.constant 0 : index
    %34 = vector.load %arg4[%c2_20, %c0_21] : memref<3x8xf32, #tpu.memory_space<vmem>>, vector<1x8xf32>
    tpu.vector_store %arg4[%c2_20, %c0_21], %33 {strides = array<i32>} : memref<3x8xf32, #tpu.memory_space<vmem>>, vector<1x8xf32>,
    return
  }
  func.func @transform_0(%arg0: i32) -> (i32, i32) {
    %c0_i32 = arith.constant 0 : i32
    %c0_i32_0 = arith.constant 0 : i32
    return %c0_i32, %arg0 : i32, i32
  }
  func.func @transform_1(%arg0: i32) -> (i32, i32) {
    %c0_i32 = arith.constant 0 : i32
    %c0_i32_0 = arith.constant 0 : i32
    %c0_i32_1 = arith.constant 0 : i32
    return %c0_i32, %c0_i32_0 : i32, i32
  }
  func.func @transform_2(%arg0: i32) -> i32 {
    %c0_i32 = arith.constant 0 : i32
    %c0_i32_0 = arith.constant 0 : i32
    return %c0_i32 : i32
  }
  func.func @transform_3(%arg0: i32) -> (i32, i32) {
    %c0_i32 = arith.constant 0 : i32
    %c0_i32_0 = arith.constant 0 : i32
    return %c0_i32, %arg0 : i32, i32
  }
}

</mosaic_0001>

<bundles_post_ra>
// kernel: tpu_custom_call.1
= control target key start
LH: loop header
LB: loop body
LE: loop exit
PB: predicated region body
PF: predicated region fallthrough
CT: control target
= control target key end

     0   :  { %8 = vsyncpa [#allocation3], 0  ;;  %s246_s0 = inlined_call_operand.hbm [shape: f32[2,8], index: 0, kind: input, shape index: {}]   ;;  %s247_s1 = inlined_call_operand.vmem [shape: f32[2,3], index: 1, kind: input, shape index: {}]   ;;  %s248_s2 = inlined_call_operand.vmem [shape: f32[3], index: 2, kind: input, shape index: {}]   ;;  %s249_s3 = inlined_call_operand.hbm [shape: f32[3,8], index: 3, kind: output, shape index: {}]  }
   0x1   :  { %9 = vsyncpa [#allocation5], 0 }
   0x2   :  { %10 = vsyncpa [#allocation8], 0 }
   0x3   :  { %11 = vsyncpa [#allocation4], 0  ;;  %s28_s14 = sshll.u32 %s247_s1, 4  ;;  %s192_s15 = smov [#allocation2]   ;;  %s29_s14 = int_to_ptr.vmem [resolvable:$true] %s28_s14 }
   0x4   :  { %s18_s16 = sshll.u32 %s192_s15, 4  ;;  %s116_s19 = scalar_lea.hbm %s246_s0, 32  ;;  %s19_s16 = int_to_ptr.vmem [resolvable:$true] %s18_s16 }
   0x5   :  { %p117_p0 = scmp.ne.s32.totalorder %s246_s0, %s116_s19  ;;  %p120_p1 = scmp.lt.u32.totalorder %s116_s19, %s246_s0 }
   0x7   :  { %p122_p2 = pnand %p120_p1, %p117_p0 }
   0x9   :  { %125 = shalt.err (!%p122_p2)
}
   0xa   :  { %s126_s24 = scalar_lea.vmem %s19_s16, 32  ;;  %p131_p4 = scmp.lt.s32.totalorder %s19_s16, %s19_s16 }
   0xb   :  { %p127_p3 = scmp.ne.s32.totalorder %s19_s16, %s126_s24  ;;  %p132_p5 = scmp.lt.s32.totalorder %s126_s24, %s126_s24 }
   0xd   :  { %p133_p6 = por %p132_p5, %p131_p4 }
   0xf   :  { %p134_p7 = pnand %p133_p6, %p127_p3 }
  0x11   :  { %137 = shalt.err (!%p134_p7)
}
  0x12   :  { %21 = dma.hbm_to_vmem [thread:$0]  %s246_s0, 32, %s19_s16, [#allocation3]  }
  0x13   :  { %s138_s26 = scalar_lea.vmem %s29_s14, 32  ;;  %p143_p9 = scmp.lt.s32.totalorder %s29_s14, %s29_s14 }
  0x14   :  { %p139_p8 = scmp.ne.s32.totalorder %s29_s14, %s138_s26  ;;  %p144_p10 = scmp.lt.s32.totalorder %s138_s26, %s138_s26 }
  0x16   :  { %p145_p11 = por %p144_p10, %p143_p9 }
  0x18   :  { %p146_p12 = pnand %p145_p11, %p139_p8 }
  0x1a   :  { %149 = shalt.err (!%p146_p12)
}
  0x1b   :  { %s193_s27 = smov [#allocation6]   ;;  %s38_s30 = sshll.u32 %s248_s2, 4  ;;  %s39_s30 = int_to_ptr.vmem [resolvable:$true] %s38_s30 }
  0x1c   :  { %31 = dma.vmem_to_smem %s29_s14, 32, %s193_s27, [#allocation5]  }
  0x1d   :  { %s150_s4 = scalar_lea.vmem %s39_s30, 16  ;;  %p155_p0 = scmp.lt.s32.totalorder %s39_s30, %s39_s30 }
  0x1e   :  { %p151_p13 = scmp.ne.s32.totalorder %s39_s30, %s150_s4  ;;  %p156_p1 = scmp.lt.s32.totalorder %s150_s4, %s150_s4 }
  0x20   :  { %p157_p2 = por %p156_p1, %p155_p0 }
  0x22   :  { %p158_p3 = pnand %p157_p2, %p151_p13 }
  0x24   :  { %161 = shalt.err (!%p158_p3)
}
  0x25   :  { %s194_s0 = smov [#allocation7]  }
  0x26   :  { %41 = dma.vmem_to_smem %s39_s30, 16, %s194_s0, [#allocation8]  }
  0x27   :  { %184 = dma.done.wait [#allocation3], 32  }
  0x28   :  { %185 = vsyncadd [#allocation3], 4294967264 }
  0x29   :  { %186 = dma.done.wait [#allocation5], 32  }
  0x2a   :  { %187 = vsyncadd [#allocation5], 4294967264 }
  0x2b   :  { %188 = dma.done.wait [#allocation8], 16  }
  0x2c   :  { %189 = vsyncadd [#allocation8], 4294967280 }
  0x2d   :  { %51 = sfence }
  0x2e   :  { %s54_s5 = sld [smem:[#allocation6]]  ;;  %s106_s7 = sld [smem:[#allocation6 + $0x1]]  ;;  %v52_v0 = vld [vmem:[#allocation2] sm:$0x1]  ;;  %v53_v1 = vld [vmem:[#allocation2 + $0x1] sm:$0x1] }
  0x2f   :  { %s105_s6 = sld [smem:[#allocation6 + $0x80]]  ;;  %s107_s8 = sld [smem:[#allocation6 + $0x81]]  ;;  %vm64_vm0 = vcmask 57344  }
  0x30   :  { %s61_s2 = sld [smem:[#allocation7]]  ;;  %s108_s9 = sld [smem:[#allocation7 + $0x1]] }
  0x31   :  { %s109_s10 = sld [smem:[#allocation6 + $0x2]]  ;;  %s195_s13 = smov [#allocation9]  }
  0x32   :  { %s110_s11 = sld [smem:[#allocation6 + $0x82]]  ;;  %s94_s14 = sshll.u32 %s195_s13, 4  ;;  %s95_s14 = int_to_ptr.vmem [resolvable:$true] %s94_s14 }
  0x33   :  { %s111_s12 = sld [smem:[#allocation7 + $0x2]]  ;;  %s162_s15 = scalar_lea.vmem %s95_s14, 64 }
  0x34   :  { %v55_v2 = vstv %s54_s5  ;;  %v67_v6 = vstv %s106_s7  ;;  %p163_p4 = scmp.ne.s32.totalorder %s95_s14, %s162_s15  ;;  %p167_p5 = scmp.lt.s32.totalorder %s95_s14, %s95_s14 }
  0x35   :  { %v56_v3 = vmul.f32 %v55_v2, %v52_v0  ;;  %v58_v4 = vstv %s105_s6  ;;  %v70_v7 = vstv %s107_s8  ;;  %v68_v9 = vmul.f32 %v67_v6, %v52_v0  ;;  %p168_p6 = scmp.lt.s32.totalorder %s162_s15, %s162_s15 }
  0x36   :  { %v59_v5 = vmul.f32 %v58_v4, %v53_v1  ;;  %v62_v8 = vstv %s61_s2  ;;  %v71_v10 = vmul.f32 %v70_v7, %v53_v1  ;;  %v74_v13 = vstv %s108_s9 }
  0x37   :  { %v78_v11 = vstv %s109_s10  ;;  %p169_p7 = por %p168_p6, %p167_p5 }
  0x38   :  { %v60_v12 = vadd.f32 %v59_v5, %v56_v3  ;;  %v79_v14 = vmul.f32 %v78_v11, %v52_v0  ;;  %v81_v15 = vstv %s110_s11  ;;  %v72_v16 = vadd.f32 %v71_v10, %v68_v9 }
  0x39   :  { %v82_v17 = vmul.f32 %v81_v15, %v53_v1  ;;  %v85_v19 = vstv %s111_s12  ;;  %p170_p8 = pnand %p169_p7, %p163_p4 }
  0x3a   :  { %v63_v18 = vadd.f32 %v62_v8, %v60_v12  ;;  %v75_v20 = vadd.f32 %v74_v13, %v72_v16 }
  0x3b   :  { %v83_v21 = vadd.f32 %v82_v17, %v79_v14 }
  0x3c   :  { %65 = vst.msk [vmem:[#allocation9] sm:$0x1] %vm64_vm0, %v63_v18  ;;  %76 = vst.msk [vmem:[#allocation9 + $0x1] sm:$0x1] %vm64_vm0, %v75_v20 }
  0x3d   :  { %v86_v22 = vadd.f32 %v85_v19, %v83_v21 }
  0x3f   :  { %87 = vst.msk [vmem:[#allocation9 + $0x2] sm:$0x1] %vm64_vm0, %v86_v22 }
  0x40   :  { %173 = shalt.err (!%p170_p8)
}
  0x41   :  { %s174_s18 = scalar_lea.hbm %s249_s3, 64 }
  0x42   :  { %p175_p9 = scmp.ne.s32.totalorder %s249_s3, %s174_s18  ;;  %p178_p10 = scmp.lt.u32.totalorder %s174_s18, %s249_s3 }
  0x44   :  { %p180_p11 = pnand %p178_p10, %p175_p9 }
  0x46   :  { %183 = shalt.err (!%p180_p11)
}
  0x47   :  { %97 = dma.vmem_to_hbm [thread:$0]  %s95_s14, 64, %s249_s3, [#allocation4]  }
  0x48   :  { %190 = dma.done.wait [#allocation4], 64  }
  0x49   :  { %191 = vsyncadd [#allocation4], 4294967232 }
  0x4a   :  { %101 = vsyncpa [#allocation3], 1 }
  0x4b   :  { %102 = vsyncpa [#allocation4], 1 }
  0x4c   :  { %103 = vsyncpa [#allocation5], 1 }
  0x4d   :  { %104 = vsyncpa [#allocation8], 1 }

</bundles_post_ra>
